<compile_context>
chip_gen: v7x
topology: tpu7x:2x2x1
jax: 0.10.0
libtpu: 0.0.40
codegen_flags: <defaults>
</compile_context>

<pallas_src>
import jax
import jax.numpy as jnp
from jax import lax
from jax.experimental import pallas as pl
from jax.experimental.pallas import tpu as pltpu


def sac_policy_kernel(frame_ref, w1_ref, b1_ref, wh_ref, bh_ref, out_ref):
    # Hidden layer: Linear + ReLU  (MXU matmul + VPU elementwise)
    z = jnp.dot(frame_ref[...], w1_ref[...], preferred_element_type=jnp.float32)
    z = jnp.maximum(z + b1_ref[...], 0.0)

    # Fused heads: one matmul produces [mean || log_std] in a lane-dense (TB, 2A) slab.
    y = jnp.dot(z, wh_ref[...], preferred_element_type=jnp.float32) + bh_ref[...]
    a = wh_ref.shape[1] // 2  # action_dim (static)

    # tanh is needed by both halves (mu = tanh(mean); log_std path starts with tanh).
    t = jnp.tanh(y)                              # EUP
    # std = exp(-5 + 3.5*(tanh+1)) = exp(3.5*t - 1.5); computing it on the whole slab
    # keeps lane layout intact (exp runs on the EUP slot; the select is one VPU op).
    std_all = jnp.exp(3.5 * t - 1.5)             # EUP + VPU FMA
    col = lax.broadcasted_iota(jnp.int32, y.shape, 1)
    out_ref[...] = jnp.where(col < a, t, std_all)   # single lane-dense store


def sac_policy_forward(frame, w1, b1, wm, bm, ws, bs, *, tb=512):
    """frame: (B, n_obs); weights pre-transposed to (in, out); biases (1, out).

    Returns (mu, std), each (B, action_dim) float32.
    """
    B, n_obs = frame.shape
    n_hidden = w1.shape[1]
    A = wm.shape[1]

    # Fuse the two heads outside the kernel (done once per set of params).
    w_heads = jnp.concatenate([wm, ws], axis=1)      # (n_hidden, 2A)
    b_heads = jnp.concatenate([bm, bs], axis=1)      # (1, 2A)

    # Batch tile: as large as reasonable (>= 512 rows when the batch allows) so the
    # per-grid-step overhead (~600 cyc) amortizes; otherwise one step over the whole
    # 8-row-aligned batch.  TB is always a multiple of 8 (sublane alignment).
    B8 = ((B + 7) // 8) * 8
    TB = min(tb, B8)
    B_pad = ((B8 + TB - 1) // TB) * TB
    if B_pad != B:
        frame = jnp.pad(frame, ((0, B_pad - B), (0, 0)))

    out = pl.pallas_call(
        sac_policy_kernel,
        out_shape=jax.ShapeDtypeStruct((B_pad, 2 * A), jnp.float32),
        grid=(B_pad // TB,),
        in_specs=[
            # frame: tiled over the batch grid axis.
            pl.BlockSpec((TB, n_obs), lambda i: (i, 0)),
            # weights / biases: constant block index -> fetched once, VMEM-resident.
            pl.BlockSpec((n_obs, n_hidden), lambda i: (0, 0)),
            pl.BlockSpec((1, n_hidden), lambda i: (0, 0)),
            pl.BlockSpec((n_hidden, 2 * A), lambda i: (0, 0)),
            pl.BlockSpec((1, 2 * A), lambda i: (0, 0)),
        ],
        out_specs=pl.BlockSpec((TB, 2 * A), lambda i: (i, 0)),
        compiler_params=pltpu.CompilerParams(
            dimension_semantics=("parallel",)),
    )(frame, w1, b1, w_heads, b_heads)

    mu = out[:B, :A]
    std = out[:B, A:]
    return mu, std


def _ref_forward(frame, w1, b1, wm, bm, ws, bs):
    """Pure-JAX reference mirroring the PyTorch module."""
    z = jax.nn.relu(frame @ w1 + b1)
    mean = z @ wm + bm
    log_std = z @ ws + bs
    log_std = jnp.tanh(log_std)
    log_std = -5.0 + 0.5 * (2.0 - (-5.0)) * (log_std + 1.0)
    return jnp.tanh(mean), jnp.exp(log_std)


if __name__ == "__main__":
    # Shapes consistent with SACPolicy(n_observations=16, action_dim=8, n_hidden=32).
    n_obs, n_hidden, action_dim = 16, 32, 8

    key = jax.random.PRNGKey(0)
    k_frame, k_w1, k_b1, k_wm, k_bm, k_ws, k_bs = jax.random.split(key, 7)

    w1 = jax.random.normal(k_w1, (n_obs, n_hidden), dtype=jnp.float32) * 0.2
    b1 = jax.random.normal(k_b1, (1, n_hidden), dtype=jnp.float32) * 0.1
    wm = jax.random.normal(k_wm, (n_hidden, action_dim), dtype=jnp.float32) * 0.2
    bm = jax.random.normal(k_bm, (1, action_dim), dtype=jnp.float32) * 0.1
    ws = jax.random.normal(k_ws, (n_hidden, action_dim), dtype=jnp.float32) * 0.2
    bs = jax.random.normal(k_bs, (1, action_dim), dtype=jnp.float32) * 0.1

    # --- test 1: tiny batch, single grid step ---
    B = 8
    frame = jax.random.normal(k_frame, (B, n_obs), dtype=jnp.float32)
    mu, std = sac_policy_forward(frame, w1, b1, wm, bm, ws, bs)
    jax.block_until_ready((mu, std))
    mu_ref, std_ref = _ref_forward(frame, w1, b1, wm, bm, ws, bs)
    assert mu.shape == (B, action_dim) and std.shape == (B, action_dim)
    assert jnp.allclose(mu, mu_ref, atol=1e-5, rtol=1e-5)
    assert jnp.allclose(std, std_ref, atol=1e-5, rtol=1e-5)

    # --- test 2: ragged batch, exercises padding + multi-step batch grid ---
    B2 = 130
    frame2 = jax.random.normal(jax.random.PRNGKey(1), (B2, n_obs), dtype=jnp.float32)
    mu2, std2 = sac_policy_forward(frame2, w1, b1, wm, bm, ws, bs, tb=64)
    jax.block_until_ready((mu2, std2))
    mu2_ref, std2_ref = _ref_forward(frame2, w1, b1, wm, bm, ws, bs)
    assert mu2.shape == (B2, action_dim) and std2.shape == (B2, action_dim)
    assert jnp.allclose(mu2, mu2_ref, atol=1e-5, rtol=1e-5)
    assert jnp.allclose(std2, std2_ref, atol=1e-5, rtol=1e-5)

    print("KERNEL_OK")
</pallas_src>

<mosaic_0001>
module attributes {stable_mosaic.version = 11 : i64} {
  func.func @sac_policy_kernel(%arg0: i32, %arg1: memref<8x16xf32, #tpu.memory_space<vmem>>, %arg2: memref<16x32xf32, #tpu.memory_space<vmem>>, %arg3: memref<1x32xf32, #tpu.memory_space<vmem>>, %arg4: memref<32x16xf32, #tpu.memory_space<vmem>>, %arg5: memref<1x16xf32, #tpu.memory_space<vmem>>, %arg6: memref<8x16xf32, #tpu.memory_space<vmem>>) attributes {dimension_semantics = [#tpu.dimension_semantics<parallel>], iteration_bounds = array<i64: 1>, scalar_prefetch = 0 : i64, scratch_operands = 0 : i64, tpu.core_type = #tpu.core_type<tc>, window_params = [{transform_indices = @transform_0, window_bounds = array<i64: 8, 16>}, {pipeline_mode = #tpu.pipeline_mode<synchronous>, transform_indices = @transform_1, window_bounds = array<i64: 16, 32>}, {pipeline_mode = #tpu.pipeline_mode<synchronous>, transform_indices = @transform_2, window_bounds = array<i64: 1, 32>}, {pipeline_mode = #tpu.pipeline_mode<synchronous>, transform_indices = @transform_3, window_bounds = array<i64: 32, 16>}, {pipeline_mode = #tpu.pipeline_mode<synchronous>, transform_indices = @transform_4, window_bounds = array<i64: 1, 16>}, {transform_indices = @transform_5, window_bounds = array<i64: 8, 16>}]} {
    %c0 = arith.constant 0 : index
    %c0_0 = arith.constant 0 : index
    %0 = vector.load %arg1[%c0, %c0_0] : memref<8x16xf32, #tpu.memory_space<vmem>>, vector<8x16xf32>
    %c0_1 = arith.constant 0 : index
    %c0_2 = arith.constant 0 : index
    %1 = vector.load %arg2[%c0_1, %c0_2] : memref<16x32xf32, #tpu.memory_space<vmem>>, vector<16x32xf32>
    %cst = arith.constant dense<0.000000e+00> : vector<8x32xf32>
    %2 = tpu.matmul %0, %1, %cst {dimension_numbers = #tpu.dot_dimension_numbers<[1], [0], [0], [1], [0, 0, 1, 1], [], []>} : vector<8x16xf32>, vector<16x32xf32>, vector<8x32xf32> -> vector<8x32xf32>
    %c0_3 = arith.constant 0 : index
    %c0_4 = arith.constant 0 : index
    %3 = vector.load %arg3[%c0_3, %c0_4] : memref<1x32xf32, #tpu.memory_space<vmem>>, vector<1x32xf32>
    %4 = vector.broadcast %3 : vector<1x32xf32> to vector<8x32xf32>
    %5 = arith.addf %2, %4 : vector<8x32xf32>
    %cst_5 = arith.constant 0.000000e+00 : f32
    %6 = vector.broadcast %cst_5 : f32 to vector<8x32xf32>
    %7 = arith.maximumf %5, %6 : vector<8x32xf32>
    %c0_6 = arith.constant 0 : index
    %c0_7 = arith.constant 0 : index
    %8 = vector.load %arg4[%c0_6, %c0_7] : memref<32x16xf32, #tpu.memory_space<vmem>>, vector<32x16xf32>
    %cst_8 = arith.constant dense<0.000000e+00> : vector<8x16xf32>
    %9 = tpu.matmul %7, %8, %cst_8 {dimension_numbers = #tpu.dot_dimension_numbers<[1], [0], [0], [1], [0, 0, 1, 1], [], []>} : vector<8x32xf32>, vector<32x16xf32>, vector<8x16xf32> -> vector<8x16xf32>
    %c0_9 = arith.constant 0 : index
    %c0_10 = arith.constant 0 : index
    %10 = vector.load %arg5[%c0_9, %c0_10] : memref<1x16xf32, #tpu.memory_space<vmem>>, vector<1x16xf32>
    %11 = vector.broadcast %10 : vector<1x16xf32> to vector<8x16xf32>
    %12 = arith.addf %9, %11 : vector<8x16xf32>
    %13 = math.tanh %12 : vector<8x16xf32>
    %cst_11 = arith.constant 3.500000e+00 : f32
    %14 = vector.broadcast %cst_11 : f32 to vector<8x16xf32>
    %15 = arith.mulf %14, %13 : vector<8x16xf32>
    %cst_12 = arith.constant 1.500000e+00 : f32
    %16 = vector.broadcast %cst_12 : f32 to vector<8x16xf32>
    %17 = arith.subf %15, %16 : vector<8x16xf32>
    %18 = math.exp %17 : vector<8x16xf32>
    %19 = tpu.iota {dimensions = array<i32: 1>} : vector<8x16xi32>
    %c8_i32 = arith.constant 8 : i32
    %20 = vector.broadcast %c8_i32 : i32 to vector<8x16xi32>
    %21 = arith.cmpi slt, %19, %20 : vector<8x16xi32>
    %22 = arith.select %21, %13, %18 : vector<8x16xi1>, vector<8x16xf32>
    %c0_13 = arith.constant 0 : index
    %c0_14 = arith.constant 0 : index
    %23 = vector.load %arg6[%c0_13, %c0_14] : memref<8x16xf32, #tpu.memory_space<vmem>>, vector<8x16xf32>
    tpu.vector_store %arg6[%c0_13, %c0_14], %22 {strides = array<i32>} : memref<8x16xf32, #tpu.memory_space<vmem>>, vector<8x16xf32>,
    return
  }
  func.func @transform_0(%arg0: i32) -> (i32, i32) {
    %c0_i32 = arith.constant 0 : i32
    %c0_i32_0 = arith.constant 0 : i32
    return %arg0, %c0_i32 : i32, i32
  }
  func.func @transform_1(%arg0: i32) -> (i32, i32) {
    %c0_i32 = arith.constant 0 : i32
    %c0_i32_0 = arith.constant 0 : i32
    %c0_i32_1 = arith.constant 0 : i32
    return %c0_i32, %c0_i32_0 : i32, i32
  }
  func.func @transform_2(%arg0: i32) -> (i32, i32) {
    %c0_i32 = arith.constant 0 : i32
    %c0_i32_0 = arith.constant 0 : i32
    %c0_i32_1 = arith.constant 0 : i32
    return %c0_i32, %c0_i32_0 : i32, i32
  }
  func.func @transform_3(%arg0: i32) -> (i32, i32) {
    %c0_i32 = arith.constant 0 : i32
    %c0_i32_0 = arith.constant 0 : i32
    %c0_i32_1 = arith.constant 0 : i32
    return %c0_i32, %c0_i32_0 : i32, i32
  }
  func.func @transform_4(%arg0: i32) -> (i32, i32) {
    %c0_i32 = arith.constant 0 : i32
    %c0_i32_0 = arith.constant 0 : i32
    %c0_i32_1 = arith.constant 0 : i32
    return %c0_i32, %c0_i32_0 : i32, i32
  }
  func.func @transform_5(%arg0: i32) -> (i32, i32) {
    %c0_i32 = arith.constant 0 : i32
    %c0_i32_0 = arith.constant 0 : i32
    return %arg0, %c0_i32 : i32, i32
  }
}

</mosaic_0001>

<bundles_post_ra>
// kernel: tpu_custom_call.1
= control target key start
LH: loop header
LB: loop body
LE: loop exit
PB: predicated region body
PF: predicated region fallthrough
CT: control target
= control target key end

     0   :  { %v287_v2 = vmov 0.0|0.0   ;;  %vm288_vm0 = vmmov 0   ;;  %v289_v4 = vmov 0.0   ;;  %s362_s0 = inlined_call_operand.vmem [shape: f32[8,16], index: 0, kind: input, shape index: {}]   ;;  %s363_s1 = inlined_call_operand.vmem [shape: f32[16,32], index: 1, kind: input, shape index: {}]   ;;  %s364_s2 = inlined_call_operand.vmem [shape: f32[1,32], index: 2, kind: input, shape index: {}]   ;;  %s365_s3 = inlined_call_operand.vmem [shape: f32[32,16], index: 3, kind: input, shape index: {}]   ;;  %s366_s4 = inlined_call_operand.vmem [shape: f32[1,16], index: 4, kind: input, shape index: {}]   ;;  %s367_s5 = inlined_call_operand.hbm [shape: f32[8,16], index: 5, kind: output, shape index: {}]  }
   0x1   :  { %v22_v0 = vld [vmem:[%s363_s1] sm:$0xff]  ;;  %v23_v1 = vld [vmem:[%s363_s1 + $0x8] sm:$0xff]  ;;  %246 = vmatprep.subr.bf16.mxu0 %v287_v2  ;;  %232 = vmatprep.mubr.msk.f32.mxu0 %vm288_vm0, %v289_v4 }
   0x2   :  { %v247_v3 = vpack.c.bf16 %v23_v1, %v22_v0  ;;  %v106_v5 = vld [vmem:[%s365_s3] sm:$0xff]  ;;  %v107_v6 = vld [vmem:[%s365_s3 + $0x8] sm:$0xff]  ;;  %249 = vmatprep.subr.bf16.mxu1 %v287_v2  ;;  %243 = vmatprep.mubr.msk.f32.mxu1 %vm288_vm0, %v289_v4 }
   0x3   :  { %v250_v7 = vpack.c.bf16 %v107_v6, %v106_v5 }
   0x4   :  { %10 = vsyncpa [#allocation3], 0  ;;  %248 = vmatpush3.bf16.msra.mxu0 %v247_v3  ;;  %v21_v8 = vld [vmem:[%s362_s0] sm:$0xff]  ;;  %vm31_vm1 = vcmask 130048   ;;  %v108_v9 = vld [vmem:[%s365_s3 + $0x10] sm:$0xff]  ;;  %vm117_vm2 = vcmask 261120   ;;  %v196_v25 = vlaneseq }
   0x5   :  { %251 = vmatpush3.bf16.msra.mxu1 %v250_v7  ;;  %v109_v10 = vld [vmem:[%s365_s3 + $0x18] sm:$0xff]  ;;  %v215_v12 = vld [vmem:[%s364_s2] ss:$0 sm:$0xff]  ;;  %s290_s2 = smov [#allocation2]  }
   0x6   :  { %252 = vmatprep.subr.bf16.mxu1 %v287_v2  ;;  %v253_v11 = vpack.c.bf16 %v109_v10, %v108_v9  ;;  %v217_v17 = vld [vmem:[%s366_s4] ss:$0 sm:$0xff]  ;;  %v197_v26 = vand.u32 127, %v196_v25  ;;  %s207_s3 = sshll.u32 %s290_s2, 4  ;;  %s208_s3 = int_to_ptr.vmem [resolvable:$true] %s207_s3 }
   0x7   :  { %233 = vmatmul.mubr.msk.f32.vlgmr.msra.gmra.mrb[0].mxu0 %vm31_vm1, %v21_v8  ;;  %s263_s4 = scalar_lea.vmem %s208_s3, 128  ;;  %p268_p1 = scmp.lt.s32.totalorder %s208_s3, %s208_s3 }
   0x8   :  { %vm198_vm3 = vcmp.lt.s32.totalorder %v197_v26, 8  ;;  %p264_p0 = scmp.ne.s32.totalorder %s208_s3, %s263_s4  ;;  %p269_p2 = scmp.lt.s32.totalorder %s263_s4, %s263_s4 }
   0x9   :  { %254 = vmatpush3.bf16.msra.mxu1 %v253_v11 }
   0xa   :  { %p270_p3 = por %p269_p2, %p268_p1 }
   0xc   :  { %p271_p4 = pnand %p270_p3, %p264_p0 }
  0xda   :  { %v101_v13 = vpop.f32.mrb[0].mxu0 }
  0xdb   :  { %v102_v14 = vadd.f32 %v215_v12, %v101_v13  ;;  %v234_v15 = vpop.f32.mrb[1].mxu0 }
  0xdd   :  { %v105_v16 = vmax.f32 %v102_v14, 0.0 }
  0xdf   :  { %244 = vmatmul.mubr.msk.f32.vlgmr.msra.gmra.mrb[0].mxu1 %vm117_vm2, %v105_v16 }
 0x1b2   :  { %v187_v18 = vpop.f32.mrb[0].mxu1 }
 0x1b3   :  { %v188_v19 = vadd.f32 %v217_v17, %v187_v18  ;;  %v245_v20 = vpop.f32.mrb[1].mxu1 }
 0x1b5   :  { %259 = vtanh.f32 %v188_v19 }
 0x1bf   :  { %v260_v21 = vpop.eup %259 }
 0x1c0   :  { %v192_v22 = vmul.f32 3.5, %v260_v21 }
 0x1c2   :  { %v219_v23 = vadd.f32 -1.5, %v192_v22 }
 0x1c4   :  { %v194_v24 = vmul.f32 1.442695, %v219_v23 }
 0x1c6   :  { %261 = vpow2.f32 %v194_v24 }
 0x1d0   :  { %v262_v27 = vpop.eup %261 }
 0x1d1   :  { %v199_v28 = vsel %vm198_vm3, %v260_v21, %v262_v27 }
 0x1d2   :  { %200 = vst.msk [vmem:[#allocation2] sm:$0xff] %vm31_vm1, %v199_v28 }
 0x1d3   :  { %274 = shalt.err (!%p271_p4)
}
 0x1d4   :  { %s275_s11 = scalar_lea.hbm %s367_s5, 128 }
 0x1d5   :  { %p276_p5 = scmp.ne.s32.totalorder %s367_s5, %s275_s11  ;;  %p279_p6 = scmp.lt.u32.totalorder %s275_s11, %s367_s5 }
 0x1d7   :  { %p281_p7 = pnand %p279_p6, %p276_p5 }
 0x1d9   :  { %284 = shalt.err (!%p281_p7)
}
 0x1da   :  { %210 = dma.vmem_to_hbm [thread:$0]  %s208_s3, 128, %s367_s5, [#allocation3]  }
 0x1db   :  { %285 = dma.done.wait [#allocation3], 128  }
 0x1dc   :  { %286 = vsyncadd [#allocation3], 4294967168 }
 0x1dd   :  { %214 = vsyncpa [#allocation3], 1 }

</bundles_post_ra>
